<compile_context>
chip_gen: v7x
topology: tpu7x:2x2x1
jax: 0.10.0
libtpu: 0.0.40
codegen_flags: <defaults>
</compile_context>

<pallas_src>
import jax
import jax.numpy as jnp
from jax.experimental import pallas as pl
from jax.experimental.pallas import tpu as pltpu

LANE = 128        # TPU lane width; padded feature / hidden / bins dimension
SUBLANE = 8       # f32 sublane granularity
D_ROWS = LANE     # weight rows per packed layer block (padded contraction dim)
BLOCK_ROWS = 136  # 128 weight rows + 1 bias row + 7 pad rows (multiple of 8)
NUM_LAYERS = 3
NEG_INF = -1e30   # mask value for padded logit lanes


def _round_up(n, m):
    return (n + m - 1) // m * m


def mcni_kernel(x_ref, p_ref, o_ref):
    """x_ref: [TB, 128], p_ref: [3*136, 128] packed (W|b) blocks, o_ref: [TB, 128]."""
    h = x_ref[...]                                                 # [TB, 128]

    # Three Linear layers; trace-time unrolled (3 iterations).
    for li in range(NUM_LAYERS):
        off = li * BLOCK_ROWS
        w = p_ref[pl.ds(off, D_ROWS), :]                           # [128, 128]
        b = p_ref[pl.ds(off + D_ROWS, 1), :]                       # [1, 128]
        h = jnp.dot(h, w, preferred_element_type=jnp.float32) + b
        if li < NUM_LAYERS - 1:
            h = jnp.maximum(h, 0.0)                                # ReLU

    # Numerically stable softmax over 128 lanes; padded lanes carry -1e30 bias
    # so exp() underflows to exactly 0 and the normalization is unchanged.
    m = jnp.max(h, axis=-1, keepdims=True)
    e = jnp.exp(h - m)
    denom = jnp.sum(e, axis=-1, keepdims=True)
    # Exact reciprocal to keep the 1e-5 tolerance; approx=True would move this
    # to the (idle) EUP slot if the tolerance were relaxed.
    o_ref[...] = e * pl.reciprocal(denom, approx=False)


def pack_params(params):
    """Pack (w1,b1,w2,b2,w3,b3) into one lane-dense [3*136, 128] f32 buffer.

    Each layer block: rows [0,128) hold W (zero padded), row 128 holds the bias
    (padded lanes = 0 for hidden layers, -1e30 for the logits layer to mask
    padded bins in the softmax), rows [129,136) are zero padding.
    """
    def block(w, b, mask_padded_lanes):
        in_dim, out_dim = w.shape
        assert in_dim <= D_ROWS and out_dim <= LANE, "dims must fit in one 128-tile"
        wb = jnp.zeros((D_ROWS, LANE), jnp.float32).at[:in_dim, :out_dim].set(w)
        fill = NEG_INF if mask_padded_lanes else 0.0
        brow = jnp.full((1, LANE), fill, jnp.float32).at[0, :out_dim].set(
            b.reshape(-1))
        pad = jnp.zeros((BLOCK_ROWS - D_ROWS - 1, LANE), jnp.float32)
        return jnp.concatenate([wb, brow, pad], axis=0)            # [136, 128]

    return jnp.concatenate(
        [
            block(params["w1"], params["b1"], False),
            block(params["w2"], params["b2"], False),
            block(params["w3"], params["b3"], True),
        ],
        axis=0,
    )                                                              # [408, 128]


def mcni_forward(x, packed_params, num_bins):
    """x: [B, input_dim] f32; packed_params: [3*136, 128] f32 from pack_params."""
    B, D = x.shape
    assert D <= LANE and num_bins <= LANE

    # Batch tiling: small batches run as a single grid step; large batches
    # stream 256-row tiles (fills the MXU M dimension) with resident weights.
    if B <= 256:
        B_pad = _round_up(B, SUBLANE)
        TB = B_pad
    else:
        TB = 256
        B_pad = _round_up(B, TB)

    # Lane/sublane-dense input: pad features to 128 (extra columns hit zero
    # weight rows) and batch to the tile size.
    x_pad = jnp.zeros((B_pad, LANE), jnp.float32).at[:B, :D].set(x)

    out = pl.pallas_call(
        mcni_kernel,
        out_shape=jax.ShapeDtypeStruct((B_pad, LANE), jnp.float32),
        grid=(B_pad // TB,),
        in_specs=[
            pl.BlockSpec((TB, LANE), lambda i: (i, 0)),            # stream x tiles
            pl.BlockSpec((NUM_LAYERS * BLOCK_ROWS, LANE),
                         lambda i: (0, 0)),                        # resident params
        ],
        out_specs=pl.BlockSpec((TB, LANE), lambda i: (i, 0)),
        compiler_params=pltpu.CompilerParams(
            dimension_semantics=("parallel",),                     # megacore split
        ),
    )(x_pad, packed_params)

    return out[:B, :num_bins]


def init_params(key, input_dim, hidden_dim, num_bins):
    """Synthetic init matching PyTorch Linear shapes (weights stored [in, out])."""
    ks = jax.random.split(key, 6)

    def lin(kw, kb, fan_in, fan_out):
        bound = 1.0 / jnp.sqrt(fan_in)
        w = jax.random.uniform(kw, (fan_in, fan_out), jnp.float32, -bound, bound)
        b = jax.random.uniform(kb, (fan_out,), jnp.float32, -bound, bound)
        return w, b

    w1, b1 = lin(ks[0], ks[1], input_dim, hidden_dim)
    w2, b2 = lin(ks[2], ks[3], hidden_dim, hidden_dim)
    w3, b3 = lin(ks[4], ks[5], hidden_dim, num_bins)
    return {"w1": w1, "b1": b1, "w2": w2, "b2": b2, "w3": w3, "b3": b3}


if __name__ == "__main__":
    key = jax.random.PRNGKey(0)
    k_x, k_p = jax.random.split(key)

    batch = 8
    input_dim = 32
    hidden_dim = 64
    num_bins = 10

    x = jax.random.normal(k_x, (batch, input_dim), dtype=jnp.float32)
    params = init_params(k_p, input_dim, hidden_dim, num_bins)
    packed = pack_params(params)

    out = mcni_forward(x, packed, num_bins)
    out = jax.block_until_ready(out)

    # Reference check in plain JAX (same math, unpadded).
    h1 = jnp.maximum(x @ params["w1"] + params["b1"], 0.0)
    h2 = jnp.maximum(h1 @ params["w2"] + params["b2"], 0.0)
    logits = h2 @ params["w3"] + params["b3"]
    ref = jax.nn.softmax(logits, axis=-1)

    assert out.shape == (batch, num_bins)
    assert jnp.allclose(out, ref, atol=1e-5), "mismatch vs reference"
    assert jnp.allclose(jnp.sum(out, axis=-1), 1.0, atol=1e-5)

    print("KERNEL_OK")
</pallas_src>

<mosaic_0001>
module attributes {stable_mosaic.version = 11 : i64} {
  func.func @mcni_kernel(%arg0: i32, %arg1: memref<8x128xf32, #tpu.memory_space<vmem>>, %arg2: memref<408x128xf32, #tpu.memory_space<vmem>>, %arg3: memref<8x128xf32, #tpu.memory_space<vmem>>) attributes {dimension_semantics = [#tpu.dimension_semantics<parallel>], iteration_bounds = array<i64: 1>, scalar_prefetch = 0 : i64, scratch_operands = 0 : i64, tpu.core_type = #tpu.core_type<tc>, window_params = [{transform_indices = @transform_0, window_bounds = array<i64: 8, 128>}, {pipeline_mode = #tpu.pipeline_mode<synchronous>, transform_indices = @transform_1, window_bounds = array<i64: 408, 128>}, {transform_indices = @transform_2, window_bounds = array<i64: 8, 128>}]} {
    %c0 = arith.constant 0 : index
    %c0_0 = arith.constant 0 : index
    %0 = vector.load %arg1[%c0, %c0_0] : memref<8x128xf32, #tpu.memory_space<vmem>>, vector<8x128xf32>
    %c0_1 = arith.constant 0 : index
    %c0_2 = arith.constant 0 : index
    %1 = vector.load %arg2[%c0_1, %c0_2] : memref<408x128xf32, #tpu.memory_space<vmem>>, vector<128x128xf32>
    %c128 = arith.constant 128 : index
    %c0_3 = arith.constant 0 : index
    %2 = vector.load %arg2[%c128, %c0_3] : memref<408x128xf32, #tpu.memory_space<vmem>>, vector<1x128xf32>
    %cst = arith.constant dense<0.000000e+00> : vector<8x128xf32>
    %3 = tpu.matmul %0, %1, %cst {dimension_numbers = #tpu.dot_dimension_numbers<[1], [0], [0], [1], [0, 0, 1, 1], [], []>} : vector<8x128xf32>, vector<128x128xf32>, vector<8x128xf32> -> vector<8x128xf32>
    %4 = vector.broadcast %2 : vector<1x128xf32> to vector<8x128xf32>
    %5 = arith.addf %3, %4 : vector<8x128xf32>
    %cst_4 = arith.constant 0.000000e+00 : f32
    %6 = vector.broadcast %cst_4 : f32 to vector<8x128xf32>
    %7 = arith.maximumf %5, %6 : vector<8x128xf32>
    %c136 = arith.constant 136 : index
    %c0_5 = arith.constant 0 : index
    %8 = vector.load %arg2[%c136, %c0_5] : memref<408x128xf32, #tpu.memory_space<vmem>>, vector<128x128xf32>
    %c264 = arith.constant 264 : index
    %c0_6 = arith.constant 0 : index
    %9 = vector.load %arg2[%c264, %c0_6] : memref<408x128xf32, #tpu.memory_space<vmem>>, vector<1x128xf32>
    %cst_7 = arith.constant dense<0.000000e+00> : vector<8x128xf32>
    %10 = tpu.matmul %7, %8, %cst_7 {dimension_numbers = #tpu.dot_dimension_numbers<[1], [0], [0], [1], [0, 0, 1, 1], [], []>} : vector<8x128xf32>, vector<128x128xf32>, vector<8x128xf32> -> vector<8x128xf32>
    %11 = vector.broadcast %9 : vector<1x128xf32> to vector<8x128xf32>
    %12 = arith.addf %10, %11 : vector<8x128xf32>
    %cst_8 = arith.constant 0.000000e+00 : f32
    %13 = vector.broadcast %cst_8 : f32 to vector<8x128xf32>
    %14 = arith.maximumf %12, %13 : vector<8x128xf32>
    %c272 = arith.constant 272 : index
    %c0_9 = arith.constant 0 : index
    %15 = vector.load %arg2[%c272, %c0_9] : memref<408x128xf32, #tpu.memory_space<vmem>>, vector<128x128xf32>
    %c400 = arith.constant 400 : index
    %c0_10 = arith.constant 0 : index
    %16 = vector.load %arg2[%c400, %c0_10] : memref<408x128xf32, #tpu.memory_space<vmem>>, vector<1x128xf32>
    %cst_11 = arith.constant dense<0.000000e+00> : vector<8x128xf32>
    %17 = tpu.matmul %14, %15, %cst_11 {dimension_numbers = #tpu.dot_dimension_numbers<[1], [0], [0], [1], [0, 0, 1, 1], [], []>} : vector<8x128xf32>, vector<128x128xf32>, vector<8x128xf32> -> vector<8x128xf32>
    %18 = vector.broadcast %16 : vector<1x128xf32> to vector<8x128xf32>
    %19 = arith.addf %17, %18 : vector<8x128xf32>
    %cst_12 = arith.constant dense<0xFF800000> : vector<8xf32>
    %20 = vector.multi_reduction <maximumf>, %19, %cst_12 [1] : vector<8x128xf32> to vector<8xf32>
    %21 = vector.shape_cast %20 : vector<8xf32> to vector<8x1xf32>
    %22 = vector.broadcast %21 : vector<8x1xf32> to vector<8x128xf32>
    %23 = arith.subf %19, %22 : vector<8x128xf32>
    %24 = math.exp %23 : vector<8x128xf32>
    %cst_13 = arith.constant dense<0.000000e+00> : vector<8xf32>
    %25 = vector.multi_reduction <add>, %24, %cst_13 [1] : vector<8x128xf32> to vector<8xf32>
    %26 = vector.shape_cast %25 : vector<8xf32> to vector<8x1xf32>
    %27 = tpu.reciprocal %26 : vector<8x1xf32> -> vector<8x1xf32>
    %28 = vector.broadcast %27 : vector<8x1xf32> to vector<8x128xf32>
    %29 = arith.mulf %24, %28 : vector<8x128xf32>
    %c0_14 = arith.constant 0 : index
    %c0_15 = arith.constant 0 : index
    %30 = vector.load %arg3[%c0_14, %c0_15] : memref<8x128xf32, #tpu.memory_space<vmem>>, vector<8x128xf32>
    tpu.vector_store %arg3[%c0_14, %c0_15], %29 {strides = array<i32>} : memref<8x128xf32, #tpu.memory_space<vmem>>, vector<8x128xf32>,
    return
  }
  func.func @transform_0(%arg0: i32) -> (i32, i32) {
    %c0_i32 = arith.constant 0 : i32
    %c0_i32_0 = arith.constant 0 : i32
    return %arg0, %c0_i32 : i32, i32
  }
  func.func @transform_1(%arg0: i32) -> (i32, i32) {
    %c0_i32 = arith.constant 0 : i32
    %c0_i32_0 = arith.constant 0 : i32
    %c0_i32_1 = arith.constant 0 : i32
    return %c0_i32, %c0_i32_0 : i32, i32
  }
  func.func @transform_2(%arg0: i32) -> (i32, i32) {
    %c0_i32 = arith.constant 0 : i32
    %c0_i32_0 = arith.constant 0 : i32
    return %arg0, %c0_i32 : i32, i32
  }
}

</mosaic_0001>

<bundles_post_ra>
// kernel: tpu_custom_call.1
= control target key start
LH: loop header
LB: loop body
LE: loop exit
PB: predicated region body
PF: predicated region fallthrough
CT: control target
= control target key end

     0   :  { %7 = vsyncpa [#allocation3], 0  ;;  %s751_s0 = inlined_call_operand.hbm [shape: f32[8,128], index: 0, kind: input, shape index: {}]   ;;  %s752_s1 = inlined_call_operand.hbm [shape: f32[408,128], index: 1, kind: input, shape index: {}]   ;;  %s753_s2 = inlined_call_operand.hbm [shape: f32[8,128], index: 2, kind: output, shape index: {}]  }
   0x1   :  { %8 = vsyncpa [#allocation6], 0 }
   0x2   :  { %9 = vsyncpa [#allocation4], 0  ;;  %s655_s9 = smov [#allocation2]   ;;  %s656_s11 = smov [#allocation5]  }
   0x3   :  { %s16_s10 = sshll.u32 %s655_s9, 4  ;;  %s25_s12 = sshll.u32 %s656_s11, 4  ;;  %s17_s10 = int_to_ptr.vmem [resolvable:$true] %s16_s10  ;;  %s678_s12 = int_to_ptr.vmem [resolvable:$true] %s25_s12 }
   0x4   :  { %s583_s15 = scalar_lea.hbm %s751_s0, 128 }
   0x5   :  { %p584_p0 = scmp.ne.s32.totalorder %s751_s0, %s583_s15  ;;  %p587_p1 = scmp.lt.u32.totalorder %s583_s15, %s751_s0 }
   0x7   :  { %p589_p2 = pnand %p587_p1, %p584_p0 }
   0x9   :  { %592 = shalt.err (!%p589_p2)
}
   0xa   :  { %s593_s20 = scalar_lea.vmem %s17_s10, 128  ;;  %p598_p4 = scmp.lt.s32.totalorder %s17_s10, %s17_s10 }
   0xb   :  { %p594_p3 = scmp.ne.s32.totalorder %s17_s10, %s593_s20  ;;  %p599_p5 = scmp.lt.s32.totalorder %s593_s20, %s593_s20 }
   0xd   :  { %p600_p6 = por %p599_p5, %p598_p4 }
   0xf   :  { %p601_p7 = pnand %p600_p6, %p594_p3 }
  0x11   :  { %604 = shalt.err (!%p601_p7)
}
  0x12   :  { %19 = dma.hbm_to_vmem [thread:$0]  %s751_s0, 128, %s17_s10, [#allocation3]  }
  0x13   :  { %s605_s25 = scalar_lea.hbm %s752_s1, 6528 }
  0x14   :  { %p606_p8 = scmp.ne.s32.totalorder %s752_s1, %s605_s25  ;;  %p609_p9 = scmp.lt.u32.totalorder %s605_s25, %s752_s1 }
  0x16   :  { %p611_p10 = pnand %p609_p9, %p606_p8 }
  0x18   :  { %614 = shalt.err (!%p611_p10)
}
  0x19   :  { %s615_s30 = scalar_lea.vmem %s678_s12, 6528  ;;  %p620_p12 = scmp.lt.s32.totalorder %s678_s12, %s678_s12 }
  0x1a   :  { %p616_p11 = scmp.ne.s32.totalorder %s678_s12, %s615_s30  ;;  %p621_p13 = scmp.lt.s32.totalorder %s615_s30, %s615_s30 }
  0x1c   :  { %p622_p0 = por %p621_p13, %p620_p12 }
  0x1e   :  { %p623_p1 = pnand %p622_p0, %p616_p11 }
  0x20   :  { %626 = shalt.err (!%p623_p1)
}
  0x21   :  { %s657_s0 = smov 128   ;;  %s658_s3 = smov 8  }
  0x22   :  { %31 = dma.hbm_to_vmem [thread:$0]  %s752_s1, 6528, %s678_s12, [#allocation6], %s657_s0, %s657_s0, %s658_s3  }
  0x23   :  { %649 = dma.done.wait [#allocation3], 128  }
  0x24   :  { %650 = vsyncadd [#allocation3], 4294967168 }
  0x25   :  { %651 = dma.done.wait [#allocation6], 6528  }
  0x26   :  { %652 = vsyncadd [#allocation6], 4294960768  ;;  %v659_v0 = vmov 0.0|0.0   ;;  %vm660_vm0 = vmmov 0   ;;  %v661_v1 = vmov 0.0   ;;  %v39_v2 = vld [vmem:[#allocation5] sm:$0xff] }
  0x27   :  { %499 = vmatprep.subr.bf16.mxu0 %v659_v0  ;;  %426 = vmatprep.mubr.msk.f32.mxu0 %vm660_vm0, %v661_v1  ;;  %v40_v3 = vld [vmem:[#allocation5 + $0x8] sm:$0xff]  ;;  %v41_v4 = vld [vmem:[#allocation5 + $0x10] sm:$0xff]  ;;  %v42_v6 = vld [vmem:[#allocation5 + $0x18] sm:$0xff]  ;;  %s662_s1 = smov [#allocation7]  }
  0x28   :  { %523 = vmatprep.subr.bf16.mxu1 %v659_v0  ;;  %461 = vmatprep.mubr.msk.f32.mxu1 %vm660_vm0, %v661_v1  ;;  %v500_v5 = vpack.c.bf16 %v40_v3, %v39_v2  ;;  %v503_v7 = vpack.c.bf16 %v42_v6, %v41_v4  ;;  %v43_v8 = vld [vmem:[#allocation5 + $0x20] sm:$0xff]  ;;  %v44_v9 = vld [vmem:[#allocation5 + $0x28] sm:$0xff]  ;;  %v132_v11 = vld [vmem:[#allocation5 + $0x90] sm:$0xff]  ;;  %s330_s6 = sshll.u32 %s662_s1, 4  ;;  %s331_s6 = int_to_ptr.vmem [resolvable:$true] %s330_s6 }
  0x29   :  { %v131_v10 = vld [vmem:[#allocation5 + $0x88] sm:$0xff]  ;;  %v133_v12 = vld [vmem:[#allocation5 + $0x98] sm:$0xff]  ;;  %v134_v13 = vld [vmem:[#allocation5 + $0xa0] sm:$0xff]  ;;  %v506_v14 = vpack.c.bf16 %v44_v9, %v43_v8  ;;  %s627_s7 = scalar_lea.vmem %s331_s6, 128  ;;  %p632_p3 = scmp.lt.s32.totalorder %s331_s6, %s331_s6 }
  0x2a   :  { %501 = vmatpush3.bf16.msra.mxu0 %v500_v5  ;;  %v524_v15 = vpack.c.bf16 %v132_v11, %v131_v10  ;;  %v45_v16 = vld [vmem:[#allocation5 + $0x30] sm:$0xff]  ;;  %v46_v17 = vld [vmem:[#allocation5 + $0x38] sm:$0xff]  ;;  %v527_v18 = vpack.c.bf16 %v134_v13, %v133_v12  ;;  %v135_v19 = vld [vmem:[#allocation5 + $0xa8] sm:$0xff]  ;;  %p628_p2 = scmp.ne.s32.totalorder %s331_s6, %s627_s7  ;;  %p633_p4 = scmp.lt.s32.totalorder %s627_s7, %s627_s7 }
  0x2b   :  { %502 = vmatprep.subr.bf16.mxu0 %v659_v0  ;;  %v136_v20 = vld [vmem:[#allocation5 + $0xb0] sm:$0xff]  ;;  %v509_v21 = vpack.c.bf16 %v46_v17, %v45_v16  ;;  %v47_v22 = vld [vmem:[#allocation5 + $0x40] sm:$0xff]  ;;  %v48_v23 = vld [vmem:[#allocation5 + $0x48] sm:$0xff] }
  0x2c   :  { %525 = vmatpush3.bf16.msra.mxu1 %v524_v15  ;;  %v530_v24 = vpack.c.bf16 %v136_v20, %v135_v19  ;;  %v137_v25 = vld [vmem:[#allocation5 + $0xb8] sm:$0xff]  ;;  %v138_v26 = vld [vmem:[#allocation5 + $0xc0] sm:$0xff]  ;;  %v512_v27 = vpack.c.bf16 %v48_v23, %v47_v22  ;;  %v49_v28 = vld [vmem:[#allocation5 + $0x50] sm:$0xff]  ;;  %p634_p5 = por %p633_p4, %p632_p3 }
  0x2d   :  { %526 = vmatprep.subr.bf16.mxu1 %v659_v0  ;;  %v50_v29 = vld [vmem:[#allocation5 + $0x58] sm:$0xff]  ;;  %v533_v30 = vpack.c.bf16 %v138_v26, %v137_v25  ;;  %v139_v31 = vld [vmem:[#allocation5 + $0xc8] sm:$0xff]  ;;  %v140_v32 = vld [vmem:[#allocation5 + $0xd0] sm:$0xff] }
  0x2e   :  { %504 = vmatpush3.bf16.msra.mxu0 %v503_v7  ;;  %v515_v33 = vpack.c.bf16 %v50_v29, %v49_v28  ;;  %v51_v34 = vld [vmem:[#allocation5 + $0x60] sm:$0xff]  ;;  %v52_v35 = vld [vmem:[#allocation5 + $0x68] sm:$0xff]  ;;  %v536_v36 = vpack.c.bf16 %v140_v32, %v139_v31  ;;  %v141_v37 = vld [vmem:[#allocation5 + $0xd8] sm:$0xff]  ;;  %p635_p6 = pnand %p634_p5, %p628_p2 }
  0x2f   :  { %505 = vmatprep.subr.bf16.mxu0 %v659_v0  ;;  %v142_v38 = vld [vmem:[#allocation5 + $0xe0] sm:$0xff]  ;;  %v518_v39 = vpack.c.bf16 %v52_v35, %v51_v34  ;;  %v53_v40 = vld [vmem:[#allocation5 + $0x70] sm:$0xff]  ;;  %v54_v41 = vld [vmem:[#allocation5 + $0x78] sm:$0xff] }
  0x30   :  { %528 = vmatpush3.bf16.msra.mxu1 %v527_v18  ;;  %v539_v42 = vpack.c.bf16 %v142_v38, %v141_v37  ;;  %v143_v43 = vld [vmem:[#allocation5 + $0xe8] sm:$0xff]  ;;  %v144_v44 = vld [vmem:[#allocation5 + $0xf0] sm:$0xff]  ;;  %v521_v45 = vpack.c.bf16 %v54_v41, %v53_v40  ;;  %v38_v47 = vld [vmem:[#allocation2] sm:$0xff] }
  0x31   :  { %529 = vmatprep.subr.bf16.mxu1 %v659_v0  ;;  %v542_v46 = vpack.c.bf16 %v144_v44, %v143_v43  ;;  %v145_v48 = vld [vmem:[#allocation5 + $0xf8] sm:$0xff]  ;;  %v146_v49 = vld [vmem:[#allocation5 + $0x100] sm:$0xff]  ;;  %v223_v51 = vld [vmem:[#allocation5 + $0x110] sm:$0xff] }
  0x32   :  { %507 = vmatpush3.bf16.msra.mxu0 %v506_v14  ;;  %v545_v50 = vpack.c.bf16 %v146_v49, %v145_v48  ;;  %v224_v52 = vld [vmem:[#allocation5 + $0x118] sm:$0xff]  ;;  %v225_v53 = vld [vmem:[#allocation5 + $0x120] sm:$0xff]  ;;  %v226_v55 = vld [vmem:[#allocation5 + $0x128] sm:$0xff] }
  0x33   :  { %508 = vmatprep.subr.bf16.mxu0 %v659_v0  ;;  %v548_v54 = vpack.c.bf16 %v224_v52, %v223_v51  ;;  %v551_v56 = vpack.c.bf16 %v226_v55, %v225_v53  ;;  %v227_v57 = vld [vmem:[#allocation5 + $0x130] sm:$0xff]  ;;  %v228_v58 = vld [vmem:[#allocation5 + $0x138] sm:$0xff]  ;;  %v229_v60 = vld [vmem:[#allocation5 + $0x140] sm:$0xff] }
  0x34   :  { %531 = vmatpush3.bf16.msra.mxu1 %v530_v24  ;;  %v554_v59 = vpack.c.bf16 %v228_v58, %v227_v57  ;;  %v230_v61 = vld [vmem:[#allocation5 + $0x148] sm:$0xff]  ;;  %v231_v63 = vld [vmem:[#allocation5 + $0x150] sm:$0xff]  ;;  %v233_v3 = vld [vmem:[#allocation5 + $0x160] sm:$0xff] }
  0x35   :  { %532 = vmatprep.subr.bf16.mxu1 %v659_v0  ;;  %v557_v62 = vpack.c.bf16 %v230_v61, %v229_v60  ;;  %v234_v4 = vld [vmem:[#allocation5 + $0x168] sm:$0xff]  ;;  %v235_v6 = vld [vmem:[#allocation5 + $0x170] sm:$0xff]  ;;  %v236_v7 = vld [vmem:[#allocation5 + $0x178] sm:$0xff] }
  0x36   :  { %510 = vmatpush3.bf16.msra.mxu0 %v509_v21  ;;  %v563_v5 = vpack.c.bf16 %v234_v4, %v233_v3  ;;  %v566_v8 = vpack.c.bf16 %v236_v7, %v235_v6  ;;  %v340_v9 = vld [vmem:[#allocation5 + $0x80] ss:$0 sm:$0xff]  ;;  %v238_v15 = vld [vmem:[#allocation5 + $0x188] sm:$0xff]  ;;  %v342_v22 = vld [vmem:[#allocation5 + $0x190] ss:$0 sm:$0xff] }
  0x37   :  { %511 = vmatprep.subr.bf16.mxu0 %v659_v0  ;;  %v237_v14 = vld [vmem:[#allocation5 + $0x180] sm:$0xff]  ;;  %v341_v17 = vld [vmem:[#allocation5 + $0x108] ss:$0 sm:$0xff] }
  0x38   :  { %534 = vmatpush3.bf16.msra.mxu1 %v533_v30  ;;  %v569_v16 = vpack.c.bf16 %v238_v15, %v237_v14 }
  0x39   :  { %535 = vmatprep.subr.bf16.mxu1 %v659_v0 }
  0x3a   :  { %513 = vmatpush3.bf16.msra.mxu0 %v512_v27 }
  0x3b   :  { %514 = vmatprep.subr.bf16.mxu0 %v659_v0 }
  0x3c   :  { %537 = vmatpush3.bf16.msra.mxu1 %v536_v36 }
  0x3d   :  { %538 = vmatprep.subr.bf16.mxu1 %v659_v0 }
  0x3e   :  { %516 = vmatpush3.bf16.msra.mxu0 %v515_v33 }
  0x3f   :  { %517 = vmatprep.subr.bf16.mxu0 %v659_v0 }
  0x40   :  { %540 = vmatpush3.bf16.msra.mxu1 %v539_v42 }
  0x41   :  { %541 = vmatprep.subr.bf16.mxu1 %v659_v0 }
  0x42   :  { %519 = vmatpush3.bf16.msra.mxu0 %v518_v39 }
  0x43   :  { %520 = vmatprep.subr.bf16.mxu0 %v659_v0 }
  0x44   :  { %543 = vmatpush3.bf16.msra.mxu1 %v542_v46 }
  0x45   :  { %544 = vmatprep.subr.bf16.mxu1 %v659_v0 }
  0x46   :  { %522 = vmatpush3.bf16.msra.mxu0 %v521_v45 }
  0x47   :  { %547 = vmatprep.subr.bf16.mxu0 %v659_v0 }
  0x48   :  { %546 = vmatpush3.bf16.msra.mxu1 %v545_v50 }
  0x49   :  { %427 = vmatmul.mubr.f32.vlgmr.msra.gmra.mrb[0].mxu0 %v38_v47 }
  0x4a   :  { %496 = vmatprep.mubr.msk.f32.mxu0 %vm660_vm0, %v661_v1  ;;  %549 = vmatpush3.bf16.msra.mxu0 %v548_v54  ;;  %v232_v1 = vld [vmem:[#allocation5 + $0x158] sm:$0xff] }
  0x4b   :  { %550 = vmatprep.subr.bf16.mxu0 %v659_v0  ;;  %v560_v2 = vpack.c.bf16 %v232_v1, %v231_v63 }
  0x4e   :  { %552 = vmatpush3.bf16.msra.mxu0 %v551_v56 }
  0x4f   :  { %553 = vmatprep.subr.bf16.mxu0 %v659_v0 }
  0x52   :  { %555 = vmatpush3.bf16.msra.mxu0 %v554_v59 }
  0x53   :  { %556 = vmatprep.subr.bf16.mxu0 %v659_v0 }
  0x56   :  { %558 = vmatpush3.bf16.msra.mxu0 %v557_v62 }
  0x57   :  { %559 = vmatprep.subr.bf16.mxu0 %v659_v0 }
  0x5a   :  { %561 = vmatpush3.bf16.msra.mxu0 %v560_v2 }
  0x5b   :  { %562 = vmatprep.subr.bf16.mxu0 %v659_v0 }
  0x5e   :  { %564 = vmatpush3.bf16.msra.mxu0 %v563_v5 }
  0x5f   :  { %565 = vmatprep.subr.bf16.mxu0 %v659_v0 }
  0x62   :  { %567 = vmatpush3.bf16.msra.mxu0 %v566_v8 }
  0x63   :  { %568 = vmatprep.subr.bf16.mxu0 %v659_v0 }
  0x66   :  { %570 = vmatpush3.bf16.msra.mxu0 %v569_v16 }
 0x11c   :  { %v126_v10 = vpop.f32.mrb[0].mxu0 }
 0x11d   :  { %v127_v11 = vadd.f32 %v340_v9, %v126_v10  ;;  %v428_v12 = vpop.f32.mrb[1].mxu0 }
 0x11f   :  { %v130_v13 = vmax.f32 %v127_v11, 0.0 }
 0x121   :  { %462 = vmatmul.mubr.f32.vlgmr.msra.gmra.mrb[0].mxu1 %v130_v13 }
 0x1f4   :  { %v218_v18 = vpop.f32.mrb[0].mxu1 }
 0x1f5   :  { %v219_v19 = vadd.f32 %v341_v17, %v218_v18  ;;  %v463_v20 = vpop.f32.mrb[1].mxu1 }
 0x1f7   :  { %v222_v21 = vmax.f32 %v219_v19, 0.0 }
 0x1f9   :  { %497 = vmatmul.mubr.f32.vlgmr.msra.gmra.mrb[2].mxu0 %v222_v21 }
 0x2cc   :  { %v310_v23 = vpop.f32.mrb[2].mxu0 }
 0x2cd   :  { %v311_v24 = vadd.f32 %v342_v22, %v310_v23  ;;  %v498_v0 = vpop.f32.mrb[3].mxu0 }
 0x2cf   :  { %314 = vmax.xlane.f32.xlu0 %v311_v24 }
 0x35c   :  { %v315_v25 = vpop.xlane.xlu0 %314 }
 0x35d   :  { %v316_v26 = vsub.f32 %v311_v24, %v315_v25 }
 0x35f   :  { %v317_v27 = vmul.f32 1.442695, %v316_v26 }
 0x361   :  { %579 = vpow2.f32 %v317_v27 }
 0x36b   :  { %v580_v28 = vpop.eup %579 }
 0x36c   :  { %319 = vadd.xlane.f32.xlu0 %v580_v28 }
 0x3f9   :  { %v320_v29 = vpop.xlane.xlu0 %319 }
 0x3fa   :  { %581 = vrcp.f32 %v320_v29 }
 0x404   :  { %v582_v30 = vpop.eup %581 }
 0x405   :  { %v322_v31 = vmul.f32 %v582_v30, %v580_v28 }
 0x407   :  { %323 = vst [vmem:[#allocation7] sm:$0xff] %v322_v31 }
 0x408   :  { %638 = shalt.err (!%p635_p6)
}
 0x409   :  { %s639_s10 = scalar_lea.hbm %s753_s2, 128 }
 0x40a   :  { %p640_p7 = scmp.ne.s32.totalorder %s753_s2, %s639_s10  ;;  %p643_p8 = scmp.lt.u32.totalorder %s639_s10, %s753_s2 }
 0x40c   :  { %p645_p9 = pnand %p643_p8, %p640_p7 }
 0x40e   :  { %648 = shalt.err (!%p645_p9)
}
 0x40f   :  { %333 = dma.vmem_to_hbm [thread:$0]  %s331_s6, 128, %s753_s2, [#allocation4]  }
 0x410   :  { %653 = dma.done.wait [#allocation4], 128  }
 0x411   :  { %654 = vsyncadd [#allocation4], 4294967168 }
 0x412   :  { %337 = vsyncpa [#allocation3], 1 }
 0x413   :  { %338 = vsyncpa [#allocation6], 1 }
 0x414   :  { %339 = vsyncpa [#allocation4], 1 }

</bundles_post_ra>
